<compile_context>
chip_gen: v7x
topology: tpu7x:2x2x1
jax: 0.10.0
libtpu: 0.0.40
codegen_flags: <defaults>
</compile_context>

<pallas_src>
import jax
import jax.numpy as jnp
from jax.experimental import pallas as pl
from jax.experimental.pallas import tpu as pltpu


def _discriminator_kernel(xt_ref, w_ref, b_ref, logits_ref, scores_ref):
    # xt_ref:     [H, B]  CLS embeddings, batch on the lane axis (any float dtype)
    # w_ref:      [H, 1]  classifier weight column, f32
    # b_ref:      [1]     classifier bias, SMEM scalar, f32
    # logits_ref: [1, B]  f32
    # scores_ref: [1, B]  f32
    xt = xt_ref[...].astype(jnp.float32)   # upcast in-kernel (free VPU filler)
    w = w_ref[...]                         # [H, 1] broadcasts across lanes

    # TODO(synk): dropout is identity here (inference); training-mode dropout
    # would use pltpu.prng_seed + pltpu.stateful_bernoulli.

    # Linear(H, 1): VPU broadcast-multiply + XLU sublane reduce -> lane-dense [1, B].
    logits = jnp.sum(xt * w, axis=0, keepdims=True) + b_ref[0]      # [1, B]
    logits_ref[...] = logits.astype(logits_ref.dtype)

    # Softmax over the batch axis (= lane axis): XLU lane reductions + EUP exp/rcp.
    m = jnp.max(logits, axis=-1, keepdims=True)                     # [1, 1]
    e = jnp.exp(logits - m)                                         # [1, B]
    s = jnp.sum(e, axis=-1, keepdims=True)                          # [1, 1]
    scores_ref[...] = (e * pl.reciprocal(s, approx=True)).astype(scores_ref.dtype)


def covid_twitter_pairwise_discriminator(contextualized_embeddings, weight, bias):
    """contextualized_embeddings: [B, S, H] (f32 or bf16)
       weight: [1, H] (PyTorch nn.Linear layout), bias: [1]
       returns (logits [B] f32, scores [B] f32)."""
    B, S, H = contextualized_embeddings.shape

    # Slice only the CLS token (no full [B,S,H] cast/copy) and transpose so the
    # batch axis is lane-dense inside the kernel.  Under jit, XLA fuses the
    # slice + transpose into a single [B,H]-sized copy; the encoder dtype is
    # preserved so bf16 inputs transfer as bf16.
    cls_t = jnp.transpose(contextualized_embeddings[:, 0, :])       # [H, B]
    w_col = weight.reshape(H, 1).astype(jnp.float32)                # [H, 1]
    b_s = bias.reshape(1).astype(jnp.float32)                       # [1] SMEM scalar

    logits2d, scores2d = pl.pallas_call(
        _discriminator_kernel,
        out_shape=(
            jax.ShapeDtypeStruct((1, B), jnp.float32),
            jax.ShapeDtypeStruct((1, B), jnp.float32),
        ),
        in_specs=[
            pl.BlockSpec(memory_space=pltpu.MemorySpace.VMEM),   # CLS slab [H, B]
            pl.BlockSpec(memory_space=pltpu.MemorySpace.VMEM),   # weight   [H, 1]
            pl.BlockSpec(memory_space=pltpu.MemorySpace.SMEM),   # bias scalar
        ],
        out_specs=(
            pl.BlockSpec(memory_space=pltpu.MemorySpace.VMEM),
            pl.BlockSpec(memory_space=pltpu.MemorySpace.VMEM),
        ),
    )(cls_t, w_col, b_s)

    return logits2d[0], scores2d[0]


def init_params(key, hidden_size):
    """Deterministic init mimicking nn.Linear(hidden_size, 1) default init."""
    kw, kb = jax.random.split(key)
    bound = 1.0 / (hidden_size ** 0.5)
    weight = jax.random.uniform(kw, (1, hidden_size), jnp.float32, -bound, bound)
    bias = jax.random.uniform(kb, (1,), jnp.float32, -bound, bound)
    return weight, bias


if __name__ == "__main__":
    B, S, H = 2, 8, 32
    key = jax.random.PRNGKey(0)
    kx, kp = jax.random.split(key)

    x = jax.random.normal(kx, (B, S, H), jnp.float32)
    weight, bias = init_params(kp, H)

    fwd = jax.jit(covid_twitter_pairwise_discriminator)
    logits, scores = fwd(x, weight, bias)
    jax.block_until_ready((logits, scores))

    # reference check in plain JAX
    ref_logits = (x[:, 0] @ weight.T + bias)[:, 0]
    ref_scores = jax.nn.softmax(ref_logits, axis=-1)
    assert jnp.allclose(logits, ref_logits, atol=1e-5, rtol=1e-5), (logits, ref_logits)
    # scores go through the approx (EUP) reciprocal -> slightly looser tolerance
    assert jnp.allclose(scores, ref_scores, atol=2e-3, rtol=2e-3), (scores, ref_scores)

    print("KERNEL_OK")
</pallas_src>

<mosaic_0001>
module attributes {stable_mosaic.version = 11 : i64} {
  func.func @_discriminator_kernel(%arg0: memref<32x2xf32, #tpu.memory_space<vmem>>, %arg1: memref<32x1xf32, #tpu.memory_space<vmem>>, %arg2: memref<1xf32, #tpu.memory_space<smem>>, %arg3: memref<1x2xf32, #tpu.memory_space<vmem>>, %arg4: memref<1x2xf32, #tpu.memory_space<vmem>>) attributes {dimension_semantics = [], scalar_prefetch = 0 : i64, scratch_operands = 0 : i64, tpu.core_type = #tpu.core_type<tc>} {
    %c0 = arith.constant 0 : index
    %c0_0 = arith.constant 0 : index
    %0 = vector.load %arg0[%c0, %c0_0] : memref<32x2xf32, #tpu.memory_space<vmem>>, vector<32x2xf32>
    %c0_1 = arith.constant 0 : index
    %c0_2 = arith.constant 0 : index
    %1 = vector.load %arg1[%c0_1, %c0_2] : memref<32x1xf32, #tpu.memory_space<vmem>>, vector<32x1xf32>
    %2 = vector.broadcast %1 : vector<32x1xf32> to vector<32x2xf32>
    %3 = arith.mulf %0, %2 : vector<32x2xf32>
    %cst = arith.constant dense<0.000000e+00> : vector<2xf32>
    %4 = vector.multi_reduction <add>, %3, %cst [0] : vector<32x2xf32> to vector<2xf32>
    %5 = vector.shape_cast %4 : vector<2xf32> to vector<1x2xf32>
    %c0_3 = arith.constant 0 : index
    %6 = memref.load %arg2[%c0_3] : memref<1xf32, #tpu.memory_space<smem>>
    %7 = vector.broadcast %6 : f32 to vector<1x2xf32>
    %8 = arith.addf %5, %7 : vector<1x2xf32>
    %c0_4 = arith.constant 0 : index
    %c0_5 = arith.constant 0 : index
    %9 = vector.load %arg3[%c0_4, %c0_5] : memref<1x2xf32, #tpu.memory_space<vmem>>, vector<1x2xf32>
    tpu.vector_store %arg3[%c0_4, %c0_5], %8 {strides = array<i32>} : memref<1x2xf32, #tpu.memory_space<vmem>>, vector<1x2xf32>,
    %cst_6 = arith.constant dense<0xFF800000> : vector<1xf32>
    %10 = vector.multi_reduction <maximumf>, %8, %cst_6 [1] : vector<1x2xf32> to vector<1xf32>
    %11 = vector.shape_cast %10 : vector<1xf32> to vector<1x1xf32>
    %12 = vector.broadcast %11 : vector<1x1xf32> to vector<1x2xf32>
    %13 = arith.subf %8, %12 : vector<1x2xf32>
    %14 = math.exp %13 : vector<1x2xf32>
    %cst_7 = arith.constant dense<0.000000e+00> : vector<1xf32>
    %15 = vector.multi_reduction <add>, %14, %cst_7 [1] : vector<1x2xf32> to vector<1xf32>
    %16 = vector.shape_cast %15 : vector<1xf32> to vector<1x1xf32>
    %17 = tpu.reciprocal %16 {approx = true} : vector<1x1xf32> -> vector<1x1xf32>
    %18 = vector.broadcast %17 : vector<1x1xf32> to vector<1x2xf32>
    %19 = arith.mulf %14, %18 : vector<1x2xf32>
    %c0_8 = arith.constant 0 : index
    %c0_9 = arith.constant 0 : index
    %20 = vector.load %arg4[%c0_8, %c0_9] : memref<1x2xf32, #tpu.memory_space<vmem>>, vector<1x2xf32>
    tpu.vector_store %arg4[%c0_8, %c0_9], %19 {strides = array<i32>} : memref<1x2xf32, #tpu.memory_space<vmem>>, vector<1x2xf32>,
    return
  }
}

</mosaic_0001>

<bundles_post_ra>
// kernel: covid_twitter_pairwise_discriminator.1
= control target key start
LH: loop header
LB: loop body
LE: loop exit
PB: predicated region body
PF: predicated region fallthrough
CT: control target
= control target key end

     0   :  { %11 = vsyncpa [#allocation4], 0  ;;  %v167_v2 = vmov 0   ;;  %s254_s0 = inlined_call_operand.vmem [shape: f32[32,2], index: 0, kind: input, shape index: {}]   ;;  %s255_s1 = inlined_call_operand.vmem [shape: f32[32,1], index: 1, kind: input, shape index: {}]   ;;  %s256_s2 = inlined_call_operand.<no memory space> [shape: f32[1], index: 2, kind: input, shape index: {}]   ;;  %s257_s3 = inlined_call_operand.hbm [shape: f32[1,2], index: 3, kind: output, shape index: {0}]   ;;  %s258_s4 = inlined_call_operand.hbm [shape: f32[1,2], index: 4, kind: output, shape index: {1}]  }
   0x1   :  { %v25_v0 = vld [vmem:[%s255_s1 + $0x10] sm:$0xff]  ;;  %v23_v1 = vld [vmem:[%s255_s1] sm:$0xff]  ;;  %114 = vset.pattern.permute.xlu1 %v167_v2  ;;  %113 = vset.pattern.permute.xlu0 %v167_v2 }
   0x2   :  { %39 = vperm.xlu1 %114, %v25_v0   ;;  %29 = vperm.xlu0 %113, %v23_v1  }
   0x3   :  { %12 = vsyncpa [#allocation6], 0  ;;  %v26_v3 = vld [vmem:[%s255_s1 + $0x18] sm:$0xff]  ;;  %v24_v4 = vld [vmem:[%s255_s1 + $0x8] sm:$0xff]  ;;  %vm51_vm0 = vcmask 15360   ;;  %v66_v29 = vstv %s256_s2  ;;  %vm68_vm1 = vcmask 8192  }
   0x4   :  { %v19_v7 = vld [vmem:[%s254_s0] sm:$0xff]  ;;  %v21_v8 = vld [vmem:[%s254_s0 + $0x10] sm:$0xff]  ;;  %v20_v9 = vld [vmem:[%s254_s0 + $0x8] sm:$0xff]  ;;  %s168_s5 = smov [#allocation3]  }
   0x5   :  { %v22_v12 = vld [vmem:[%s254_s0 + $0x18] sm:$0xff]  ;;  %s88_s6 = sshll.u32 %s168_s5, 4  ;;  %s89_s6 = int_to_ptr.vmem [resolvable:$true] %s88_s6 }
   0x6   :  { %44 = vperm.xlu1 %114, %v26_v3   ;;  %34 = vperm.xlu0 %113, %v24_v4   ;;  %s119_s2 = scalar_lea.vmem %s89_s6, 16  ;;  %s123_s7 = scalar_lea.vmem %s89_s6, 32 }
   0x7   :  { %p120_p0 = scmp.ne.s32.totalorder %s89_s6, %s119_s2  ;;  %p124_p1 = scmp.lt.s32.totalorder %s89_s6, %s89_s6 }
   0x8   :  { %p125_p2 = scmp.lt.s32.totalorder %s123_s7, %s119_s2 }
   0xa   :  { %p126_p3 = por %p125_p2, %p124_p1 }
   0xc   :  { %p127_p4 = pnand %p126_p3, %p120_p0 }
  0x81   :  { %v40_v5 = vpop.permute.xlu1 %39  ;;  %v30_v6 = vpop.permute.xlu0 %29 }
  0x82   :  { %v47_v10 = vmul.f32 %v30_v6, %v19_v7  ;;  %v49_v14 = vmul.f32 %v40_v5, %v21_v8 }
  0x84   :  { %v52_v16 = vsel %vm51_vm0, %v47_v10, 0.0  ;;  %v55_v20 = vsel %vm51_vm0, %v49_v14, 0.0 }
  0x85   :  { %v45_v11 = vpop.permute.xlu1 %44  ;;  %v35_v13 = vpop.permute.xlu0 %34 }
  0x86   :  { %v48_v15 = vmul.f32 %v35_v13, %v20_v9  ;;  %v50_v17 = vmul.f32 %v45_v11, %v22_v12 }
  0x88   :  { %v53_v18 = vsel %vm51_vm0, %v48_v15, 0.0  ;;  %v57_v22 = vsel %vm51_vm0, %v50_v17, 0.0 }
  0x89   :  { %v54_v19 = vadd.f32 %v53_v18, %v52_v16 }
  0x8b   :  { %v56_v21 = vadd.f32 %v55_v20, %v54_v19 }
  0x8d   :  { %v58_v23 = vadd.f32 %v57_v22, %v56_v21 }
  0x8f   :  { %v59_v24 = vrot.slane %v58_v23, 4 }
  0x91   :  { %v60_v25 = vadd.f32 %v59_v24, %v58_v23 }
  0x93   :  { %v61_v26 = vrot.slane %v60_v25, 2 }
  0x95   :  { %v62_v27 = vadd.f32 %v61_v26, %v60_v25 }
  0x97   :  { %v63_v28 = vrot.slane %v62_v27, 1 }
  0x99   :  { %v64_v30 = vadd.f32 %v63_v28, %v62_v27 }
  0x9b   :  { %v67_v31 = vadd.f32 %v66_v29, %v64_v30 }
  0x9d   :  { %v70_v32 = vsel %vm51_vm0, %v67_v31, -inf  ;;  %69 = vst.msk [vmem:[#allocation3] sm:$0x1] %vm68_vm1, %v67_v31 }
  0x9e   :  { %71 = vmax.xlane.f32.xlu0 %v70_v32 }
 0x12b   :  { %v72_v33 = vpop.xlane.xlu0 %71 }
 0x12c   :  { %v73_v34 = vsub.f32 %v67_v31, %v72_v33 }
 0x12e   :  { %v74_v35 = vmul.f32 1.442695, %v73_v34 }
 0x130   :  { %115 = vpow2.f32 %v74_v35 }
 0x13a   :  { %v116_v36 = vpop.eup %115 }
 0x13b   :  { %v76_v37 = vsel %vm51_vm0, %v116_v36, 0.0 }
 0x13c   :  { %77 = vadd.xlane.f32.xlu1 %v76_v37 }
 0x13d   :  { %130 = shalt.err (!%p127_p4)
}
 0x13e   :  { %s131_s10 = scalar_lea.hbm %s257_s3, 16 }
 0x13f   :  { %p132_p5 = scmp.ne.s32.totalorder %s257_s3, %s131_s10  ;;  %p135_p6 = scmp.lt.u32.totalorder %s131_s10, %s257_s3 }
 0x141   :  { %p137_p7 = pnand %p135_p6, %p132_p5 }
 0x143   :  { %140 = shalt.err (!%p137_p7)
}
 0x144   :  { %91 = dma.vmem_to_hbm [thread:$0]  %s89_s6, 16, %s257_s3, [#allocation4]  }
 0x145   :  { %s169_s17 = smov [#allocation5]  }
 0x146   :  { %s98_s18 = sshll.u32 %s169_s17, 4  ;;  %s99_s18 = int_to_ptr.vmem [resolvable:$true] %s98_s18 }
 0x147   :  { %s141_s19 = scalar_lea.vmem %s99_s18, 16  ;;  %s145_s20 = scalar_lea.vmem %s99_s18, 32 }
 0x148   :  { %p142_p8 = scmp.ne.s32.totalorder %s99_s18, %s141_s19  ;;  %p146_p9 = scmp.lt.s32.totalorder %s99_s18, %s99_s18 }
 0x149   :  { %p147_p10 = scmp.lt.s32.totalorder %s145_s20, %s141_s19 }
 0x14b   :  { %p148_p11 = por %p147_p10, %p146_p9 }
 0x14d   :  { %p149_p12 = pnand %p148_p11, %p142_p8 }
 0x1c9   :  { %v78_v38 = vpop.xlane.xlu1 %77 }
 0x1ca   :  { %117 = vrcp.f32 %v78_v38 }
 0x1d4   :  { %v118_v39 = vpop.eup %117 }
 0x1d5   :  { %v80_v40 = vmul.f32 %v118_v39, %v116_v36 }
 0x1d7   :  { %81 = vst.msk [vmem:[#allocation5] sm:$0x1] %vm68_vm1, %v80_v40 }
 0x1d8   :  { %152 = shalt.err (!%p149_p12)
}
 0x1d9   :  { %s153_s3 = scalar_lea.hbm %s258_s4, 16 }
 0x1da   :  { %p154_p13 = scmp.ne.s32.totalorder %s258_s4, %s153_s3  ;;  %p157_p0 = scmp.lt.u32.totalorder %s153_s3, %s258_s4 }
 0x1dc   :  { %p159_p1 = pnand %p157_p0, %p154_p13 }
 0x1de   :  { %162 = shalt.err (!%p159_p1)
}
 0x1df   :  { %101 = dma.vmem_to_hbm [thread:$0]  %s99_s18, 16, %s258_s4, [#allocation6]  }
 0x1e0   :  { %163 = dma.done.wait [#allocation4], 16  }
 0x1e1   :  { %164 = vsyncadd [#allocation4], 4294967280 }
 0x1e2   :  { %165 = dma.done.wait [#allocation6], 16  }
 0x1e3   :  { %166 = vsyncadd [#allocation6], 4294967280 }
 0x1e4   :  { %108 = vsyncpa [#allocation4], 1 }
 0x1e5   :  { %109 = vsyncpa [#allocation6], 1 }

</bundles_post_ra>
